<compile_context>
chip_gen: v7x
topology: tpu7x:2x2x1
jax: 0.10.0
libtpu: 0.0.40
codegen_flags: <defaults>
</compile_context>

<pallas_src>
import jax
import jax.numpy as jnp
from jax.experimental import pallas as pl
from jax.experimental.pallas import tpu as pltpu

IMAGE_ENCODING_VEC_LENGTH = 128   # feature_embedding_len for the image branch
ACTION_CLASSNUM = 8               # number of discrete navigation actions
LANE_PAD = 128                    # lane-dense padded width of the final layer
BATCH_TILE = 128                  # batch tile when the batch is large


# ----------------------------------------------------------------------------
# Pallas kernel: fused mean-pool (embedding stand-in, folded) + decisionHead
#   pooled_a = mean_{h,w}(A)                 (XLU lane reduction, [B, C])
#   pooled_b = mean_{h,w}(B)
#   h1  = relu(pooled_a @ w1c_fold + pooled_b @ w1g_fold + b1)   # [B, 1024]
#   h2  = relu(h1 @ w2 + b2)                                     # [B, 256]
#   out = relu(h2 @ w3_pad + b3_pad)        (cols >= 8 are zeros)# [B, 128]
# ----------------------------------------------------------------------------
def _navnet_kernel(a_ref, b_ref,
                   w1c_ref, w1g_ref, b1_ref,
                   w2_ref, b2_ref,
                   w3_ref, b3_ref,
                   out_ref):
    inv_hw = 1.0 / float(a_ref.shape[-1])

    # Embedding stand-in: mean-pool over the spatial (lane) axis.
    pooled_a = (jnp.sum(a_ref[...], axis=-1) * inv_hw).astype(jnp.bfloat16)   # [tb, C]
    pooled_b = (jnp.sum(b_ref[...], axis=-1) * inv_hw).astype(jnp.bfloat16)   # [tb, C]

    # Layer 1: projection + cat + Linear(2F, 1024), all folded into two tiny
    # [C, 1024] matmuls (MXU accumulates, f32).
    h1 = (jnp.dot(pooled_a, w1c_ref[...], preferred_element_type=jnp.float32)
          + jnp.dot(pooled_b, w1g_ref[...], preferred_element_type=jnp.float32)
          + b1_ref[...])                                                       # [tb, 1024]
    h1 = jnp.maximum(h1, 0.0)

    # Layer 2: Linear(1024, 256) + ReLU (bf16 weights, f32 accumulate).
    h2 = jnp.dot(h1.astype(jnp.bfloat16), w2_ref[...],
                 preferred_element_type=jnp.float32) + b2_ref[...]             # [tb, 256]
    h2 = jnp.maximum(h2, 0.0)

    # Layer 3: Linear(256, ACTION_CLASSNUM) + ReLU, lane-dense padded to 128.
    o = jnp.dot(h2.astype(jnp.bfloat16), w3_ref[...],
                preferred_element_type=jnp.float32) + b3_ref[...]              # [tb, 128]
    out_ref[...] = jnp.maximum(o, 0.0)


def _navnet_pallas(a3, b3, kp):
    """Batch-tiled 1-D grid; weights use constant block indices so they are
    DMA'd once and stay VMEM-resident across grid steps (~0.6 MiB total)."""
    B, C, HW = a3.shape
    if B > BATCH_TILE and B % BATCH_TILE == 0:
        tile_b = BATCH_TILE
    else:
        tile_b = B                          # single grid step (B=2 test case)
    grid = (B // tile_b,)

    img_spec = pl.BlockSpec((tile_b, C, HW), lambda i: (i, 0, 0))
    out_spec = pl.BlockSpec((tile_b, LANE_PAD), lambda i: (i, 0))

    def _const(arr):
        # Full-array block, constant index -> fetched once, resident in VMEM.
        return pl.BlockSpec(arr.shape, lambda i: (0, 0))

    weights = (kp["w1c"], kp["w1g"], kp["b1"],
               kp["w2"], kp["b2"],
               kp["w3_pad"], kp["b3_pad"])

    return pl.pallas_call(
        _navnet_kernel,
        out_shape=jax.ShapeDtypeStruct((B, LANE_PAD), jnp.float32),
        grid=grid,
        in_specs=[img_spec, img_spec] + [_const(w) for w in weights],
        out_specs=out_spec,
        compiler_params=pltpu.CompilerParams(
            dimension_semantics=("parallel",)),     # megacore-shard the batch
    )(a3, b3, *weights)


# ----------------------------------------------------------------------------
# Parameter init (deterministic, PyTorch-Linear-style U(-1/sqrt(fan_in)))
# ----------------------------------------------------------------------------
def init_params(key, C=4):
    F = IMAGE_ENCODING_VEC_LENGTH
    dims = [(2 * F, 1024), (1024, 256), (256, ACTION_CLASSNUM)]
    params = {}
    keys = jax.random.split(key, 2 * len(dims) + 1)
    for i, (fan_in, fan_out) in enumerate(dims):
        bound = 1.0 / (fan_in ** 0.5)
        params[f"w{i + 1}"] = jax.random.uniform(
            keys[2 * i], (fan_in, fan_out), jnp.float32, -bound, bound)
        params[f"b{i + 1}"] = jax.random.uniform(
            keys[2 * i + 1], (1, fan_out), jnp.float32, -bound, bound)
    # TODO(synk): pretrained TripletNetImage backbone is external to this
    # module; stand-in = mean-pool over HxW followed by a [C, F] projection.
    params["w_embed"] = jax.random.uniform(
        keys[-1], (C, F), jnp.float32, -0.5, 0.5)
    return params


def prepare_params(params):
    """One-time preprocessing into kernel-ready layout (outside the hot path):
    fold the linear embedding projection into the split layer-1 weights, cast
    weights to bf16, pad the final layer to a lane-dense 128-wide slab."""
    F = IMAGE_ENCODING_VEC_LENGTH
    w1 = params["w1"]                                   # [2F, 1024]
    w_embed = params["w_embed"]                         # [C, F]
    # h1_pre = mean_a @ (w_embed @ w1[:F]) + mean_b @ (w_embed @ w1[F:]) + b1
    w1c_fold = jnp.dot(w_embed, w1[:F]).astype(jnp.bfloat16)   # [C, 1024]
    w1g_fold = jnp.dot(w_embed, w1[F:]).astype(jnp.bfloat16)   # [C, 1024]

    w3_pad = jnp.zeros((256, LANE_PAD), jnp.float32).at[:, :ACTION_CLASSNUM].set(
        params["w3"]).astype(jnp.bfloat16)
    b3_pad = jnp.zeros((1, LANE_PAD), jnp.float32).at[:, :ACTION_CLASSNUM].set(
        params["b3"])
    return {
        "w1c": w1c_fold,
        "w1g": w1g_fold,
        "b1": params["b1"].astype(jnp.float32),
        "w2": params["w2"].astype(jnp.bfloat16),
        "b2": params["b2"].astype(jnp.float32),
        "w3_pad": w3_pad,
        "b3_pad": b3_pad,
    }


# ----------------------------------------------------------------------------
# Forward (matches NavigationNet.forward with only_image_branch=True)
# ----------------------------------------------------------------------------
def navigation_net_forward(A_img, B_img, kparams):
    B, C, H, W = A_img.shape
    a3 = A_img.reshape(B, C, H * W)          # free reshape of contiguous NCHW
    b3 = B_img.reshape(B, C, H * W)
    out = _navnet_pallas(a3, b3, kparams)    # [B, 128]
    return out[:, :ACTION_CLASSNUM]          # [B, ACTION_CLASSNUM]


# Plain-JAX reference mirroring the kernel math (same dtypes) for a sanity check.
def _reference_forward(A_img, B_img, kp):
    B, C, H, W = A_img.shape
    inv_hw = 1.0 / float(H * W)
    pa = (A_img.reshape(B, C, H * W).sum(-1) * inv_hw).astype(jnp.bfloat16)
    pb = (B_img.reshape(B, C, H * W).sum(-1) * inv_hw).astype(jnp.bfloat16)
    h1 = (jnp.dot(pa, kp["w1c"], preferred_element_type=jnp.float32)
          + jnp.dot(pb, kp["w1g"], preferred_element_type=jnp.float32)
          + kp["b1"])
    h1 = jnp.maximum(h1, 0.0)
    h2 = jnp.dot(h1.astype(jnp.bfloat16), kp["w2"],
                 preferred_element_type=jnp.float32) + kp["b2"]
    h2 = jnp.maximum(h2, 0.0)
    o = jnp.dot(h2.astype(jnp.bfloat16), kp["w3_pad"],
                preferred_element_type=jnp.float32) + kp["b3_pad"]
    return jnp.maximum(o, 0.0)[:, :ACTION_CLASSNUM]


if __name__ == "__main__":
    key = jax.random.PRNGKey(0)
    k_a, k_b, k_p = jax.random.split(key, 3)

    # Small NCHW images: batch=2, channels=4, spatial=16x16
    A_img = jax.random.normal(k_a, (2, 4, 16, 16), jnp.float32)
    B_img = jax.random.normal(k_b, (2, 4, 16, 16), jnp.float32)

    raw_params = init_params(k_p, C=4)
    kparams = prepare_params(raw_params)

    fwd = jax.jit(navigation_net_forward)
    out = fwd(A_img, B_img, kparams)
    jax.block_until_ready(out)

    ref = _reference_forward(A_img, B_img, kparams)
    jax.block_until_ready(ref)

    assert out.shape == (2, ACTION_CLASSNUM)
    assert bool(jnp.all(out >= 0.0))                       # final ReLU (per spec)
    assert bool(jnp.all(jnp.isfinite(out)))
    assert bool(jnp.allclose(out, ref, rtol=5e-2, atol=1e-3))
    print("KERNEL_OK")
</pallas_src>

<mosaic_0001>
module attributes {stable_mosaic.version = 11 : i64} {
  func.func @_navnet_kernel(%arg0: i32, %arg1: memref<2x4x256xf32, #tpu.memory_space<vmem>>, %arg2: memref<2x4x256xf32, #tpu.memory_space<vmem>>, %arg3: memref<4x1024xbf16, #tpu.memory_space<vmem>>, %arg4: memref<4x1024xbf16, #tpu.memory_space<vmem>>, %arg5: memref<1x1024xf32, #tpu.memory_space<vmem>>, %arg6: memref<1024x256xbf16, #tpu.memory_space<vmem>>, %arg7: memref<1x256xf32, #tpu.memory_space<vmem>>, %arg8: memref<256x128xbf16, #tpu.memory_space<vmem>>, %arg9: memref<1x128xf32, #tpu.memory_space<vmem>>, %arg10: memref<2x128xf32, #tpu.memory_space<vmem>>) attributes {dimension_semantics = [#tpu.dimension_semantics<parallel>], iteration_bounds = array<i64: 1>, scalar_prefetch = 0 : i64, scratch_operands = 0 : i64, tpu.core_type = #tpu.core_type<tc>, window_params = [{transform_indices = @transform_0, window_bounds = array<i64: 2, 4, 256>}, {transform_indices = @transform_1, window_bounds = array<i64: 2, 4, 256>}, {pipeline_mode = #tpu.pipeline_mode<synchronous>, transform_indices = @transform_2, window_bounds = array<i64: 4, 1024>}, {pipeline_mode = #tpu.pipeline_mode<synchronous>, transform_indices = @transform_3, window_bounds = array<i64: 4, 1024>}, {pipeline_mode = #tpu.pipeline_mode<synchronous>, transform_indices = @transform_4, window_bounds = array<i64: 1, 1024>}, {pipeline_mode = #tpu.pipeline_mode<synchronous>, transform_indices = @transform_5, window_bounds = array<i64: 1024, 256>}, {pipeline_mode = #tpu.pipeline_mode<synchronous>, transform_indices = @transform_6, window_bounds = array<i64: 1, 256>}, {pipeline_mode = #tpu.pipeline_mode<synchronous>, transform_indices = @transform_7, window_bounds = array<i64: 256, 128>}, {pipeline_mode = #tpu.pipeline_mode<synchronous>, transform_indices = @transform_8, window_bounds = array<i64: 1, 128>}, {transform_indices = @transform_9, window_bounds = array<i64: 2, 128>}]} {
    %c0 = arith.constant 0 : index
    %c0_0 = arith.constant 0 : index
    %c0_1 = arith.constant 0 : index
    %0 = vector.load %arg1[%c0, %c0_0, %c0_1] : memref<2x4x256xf32, #tpu.memory_space<vmem>>, vector<2x4x256xf32>
    %cst = arith.constant dense<0.000000e+00> : vector<2x4xf32>
    %1 = vector.multi_reduction <add>, %0, %cst [2] : vector<2x4x256xf32> to vector<2x4xf32>
    %cst_2 = arith.constant 3.906250e-03 : f32
    %2 = vector.broadcast %cst_2 : f32 to vector<2x4xf32>
    %3 = arith.mulf %1, %2 : vector<2x4xf32>
    %4 = arith.truncf %3 : vector<2x4xf32> to vector<2x4xbf16>
    %c0_3 = arith.constant 0 : index
    %c0_4 = arith.constant 0 : index
    %c0_5 = arith.constant 0 : index
    %5 = vector.load %arg2[%c0_3, %c0_4, %c0_5] : memref<2x4x256xf32, #tpu.memory_space<vmem>>, vector<2x4x256xf32>
    %cst_6 = arith.constant dense<0.000000e+00> : vector<2x4xf32>
    %6 = vector.multi_reduction <add>, %5, %cst_6 [2] : vector<2x4x256xf32> to vector<2x4xf32>
    %cst_7 = arith.constant 3.906250e-03 : f32
    %7 = vector.broadcast %cst_7 : f32 to vector<2x4xf32>
    %8 = arith.mulf %6, %7 : vector<2x4xf32>
    %9 = arith.truncf %8 : vector<2x4xf32> to vector<2x4xbf16>
    %c0_8 = arith.constant 0 : index
    %c0_9 = arith.constant 0 : index
    %10 = vector.load %arg3[%c0_8, %c0_9] : memref<4x1024xbf16, #tpu.memory_space<vmem>>, vector<4x1024xbf16>
    %cst_10 = arith.constant dense<0.000000e+00> : vector<2x1024xf32>
    %11 = tpu.matmul %4, %10, %cst_10 {dimension_numbers = #tpu.dot_dimension_numbers<[1], [0], [0], [1], [0, 0, 1, 1], [], []>} : vector<2x4xbf16>, vector<4x1024xbf16>, vector<2x1024xf32> -> vector<2x1024xf32>
    %c0_11 = arith.constant 0 : index
    %c0_12 = arith.constant 0 : index
    %12 = vector.load %arg4[%c0_11, %c0_12] : memref<4x1024xbf16, #tpu.memory_space<vmem>>, vector<4x1024xbf16>
    %cst_13 = arith.constant dense<0.000000e+00> : vector<2x1024xf32>
    %13 = tpu.matmul %9, %12, %cst_13 {dimension_numbers = #tpu.dot_dimension_numbers<[1], [0], [0], [1], [0, 0, 1, 1], [], []>} : vector<2x4xbf16>, vector<4x1024xbf16>, vector<2x1024xf32> -> vector<2x1024xf32>
    %14 = arith.addf %11, %13 : vector<2x1024xf32>
    %c0_14 = arith.constant 0 : index
    %c0_15 = arith.constant 0 : index
    %15 = vector.load %arg5[%c0_14, %c0_15] : memref<1x1024xf32, #tpu.memory_space<vmem>>, vector<1x1024xf32>
    %16 = vector.broadcast %15 : vector<1x1024xf32> to vector<2x1024xf32>
    %17 = arith.addf %14, %16 : vector<2x1024xf32>
    %cst_16 = arith.constant 0.000000e+00 : f32
    %18 = vector.broadcast %cst_16 : f32 to vector<2x1024xf32>
    %19 = arith.maximumf %17, %18 : vector<2x1024xf32>
    %20 = arith.truncf %19 : vector<2x1024xf32> to vector<2x1024xbf16>
    %c0_17 = arith.constant 0 : index
    %c0_18 = arith.constant 0 : index
    %21 = vector.load %arg6[%c0_17, %c0_18] : memref<1024x256xbf16, #tpu.memory_space<vmem>>, vector<1024x256xbf16>
    %cst_19 = arith.constant dense<0.000000e+00> : vector<2x256xf32>
    %22 = tpu.matmul %20, %21, %cst_19 {dimension_numbers = #tpu.dot_dimension_numbers<[1], [0], [0], [1], [0, 0, 1, 1], [], []>} : vector<2x1024xbf16>, vector<1024x256xbf16>, vector<2x256xf32> -> vector<2x256xf32>
    %c0_20 = arith.constant 0 : index
    %c0_21 = arith.constant 0 : index
    %23 = vector.load %arg7[%c0_20, %c0_21] : memref<1x256xf32, #tpu.memory_space<vmem>>, vector<1x256xf32>
    %24 = vector.broadcast %23 : vector<1x256xf32> to vector<2x256xf32>
    %25 = arith.addf %22, %24 : vector<2x256xf32>
    %cst_22 = arith.constant 0.000000e+00 : f32
    %26 = vector.broadcast %cst_22 : f32 to vector<2x256xf32>
    %27 = arith.maximumf %25, %26 : vector<2x256xf32>
    %28 = arith.truncf %27 : vector<2x256xf32> to vector<2x256xbf16>
    %c0_23 = arith.constant 0 : index
    %c0_24 = arith.constant 0 : index
    %29 = vector.load %arg8[%c0_23, %c0_24] : memref<256x128xbf16, #tpu.memory_space<vmem>>, vector<256x128xbf16>
    %cst_25 = arith.constant dense<0.000000e+00> : vector<2x128xf32>
    %30 = tpu.matmul %28, %29, %cst_25 {dimension_numbers = #tpu.dot_dimension_numbers<[1], [0], [0], [1], [0, 0, 1, 1], [], []>} : vector<2x256xbf16>, vector<256x128xbf16>, vector<2x128xf32> -> vector<2x128xf32>
    %c0_26 = arith.constant 0 : index
    %c0_27 = arith.constant 0 : index
    %31 = vector.load %arg9[%c0_26, %c0_27] : memref<1x128xf32, #tpu.memory_space<vmem>>, vector<1x128xf32>
    %32 = vector.broadcast %31 : vector<1x128xf32> to vector<2x128xf32>
    %33 = arith.addf %30, %32 : vector<2x128xf32>
    %cst_28 = arith.constant 0.000000e+00 : f32
    %34 = vector.broadcast %cst_28 : f32 to vector<2x128xf32>
    %35 = arith.maximumf %33, %34 : vector<2x128xf32>
    %c0_29 = arith.constant 0 : index
    %c0_30 = arith.constant 0 : index
    %36 = vector.load %arg10[%c0_29, %c0_30] : memref<2x128xf32, #tpu.memory_space<vmem>>, vector<2x128xf32>
    tpu.vector_store %arg10[%c0_29, %c0_30], %35 {strides = array<i32>} : memref<2x128xf32, #tpu.memory_space<vmem>>, vector<2x128xf32>,
    return
  }
  func.func @transform_0(%arg0: i32) -> (i32, i32, i32) {
    %c0_i32 = arith.constant 0 : i32
    %c0_i32_0 = arith.constant 0 : i32
    %c0_i32_1 = arith.constant 0 : i32
    return %arg0, %c0_i32, %c0_i32_0 : i32, i32, i32
  }
  func.func @transform_1(%arg0: i32) -> (i32, i32, i32) {
    %c0_i32 = arith.constant 0 : i32
    %c0_i32_0 = arith.constant 0 : i32
    %c0_i32_1 = arith.constant 0 : i32
    return %arg0, %c0_i32, %c0_i32_0 : i32, i32, i32
  }
  func.func @transform_2(%arg0: i32) -> (i32, i32) {
    %c0_i32 = arith.constant 0 : i32
    %c0_i32_0 = arith.constant 0 : i32
    %c0_i32_1 = arith.constant 0 : i32
    return %c0_i32, %c0_i32_0 : i32, i32
  }
  func.func @transform_3(%arg0: i32) -> (i32, i32) {
    %c0_i32 = arith.constant 0 : i32
    %c0_i32_0 = arith.constant 0 : i32
    %c0_i32_1 = arith.constant 0 : i32
    return %c0_i32, %c0_i32_0 : i32, i32
  }
  func.func @transform_4(%arg0: i32) -> (i32, i32) {
    %c0_i32 = arith.constant 0 : i32
    %c0_i32_0 = arith.constant 0 : i32
    %c0_i32_1 = arith.constant 0 : i32
    return %c0_i32, %c0_i32_0 : i32, i32
  }
  func.func @transform_5(%arg0: i32) -> (i32, i32) {
    %c0_i32 = arith.constant 0 : i32
    %c0_i32_0 = arith.constant 0 : i32
    %c0_i32_1 = arith.constant 0 : i32
    return %c0_i32, %c0_i32_0 : i32, i32
  }
  func.func @transform_6(%arg0: i32) -> (i32, i32) {
    %c0_i32 = arith.constant 0 : i32
    %c0_i32_0 = arith.constant 0 : i32
    %c0_i32_1 = arith.constant 0 : i32
    return %c0_i32, %c0_i32_0 : i32, i32
  }
  func.func @transform_7(%arg0: i32) -> (i32, i32) {
    %c0_i32 = arith.constant 0 : i32
    %c0_i32_0 = arith.constant 0 : i32
    %c0_i32_1 = arith.constant 0 : i32
    return %c0_i32, %c0_i32_0 : i32, i32
  }
  func.func @transform_8(%arg0: i32) -> (i32, i32) {
    %c0_i32 = arith.constant 0 : i32
    %c0_i32_0 = arith.constant 0 : i32
    %c0_i32_1 = arith.constant 0 : i32
    return %c0_i32, %c0_i32_0 : i32, i32
  }
  func.func @transform_9(%arg0: i32) -> (i32, i32) {
    %c0_i32 = arith.constant 0 : i32
    %c0_i32_0 = arith.constant 0 : i32
    return %arg0, %c0_i32 : i32, i32
  }
}

</mosaic_0001>

<bundles_post_ra>
// kernel: navigation_net_forward.1
= control target key start
LH: loop header
LB: loop body
LE: loop exit
PB: predicated region body
PF: predicated region fallthrough
CT: control target
= control target key end

     0   :  { %14 = vsyncpa [#allocation3], 0  ;;  %s2557_s0 = inlined_call_operand.vmem [shape: f32[2,4,256], index: 0, kind: input, shape index: {}]   ;;  %s2558_s1 = inlined_call_operand.vmem [shape: f32[2,4,256], index: 1, kind: input, shape index: {}]   ;;  %s2559_s2 = inlined_call_operand.vmem [shape: bf16[4,1024], index: 2, kind: input, shape index: {}]   ;;  %s2560_s3 = inlined_call_operand.vmem [shape: bf16[4,1024], index: 3, kind: input, shape index: {}]   ;;  %s2561_s4 = inlined_call_operand.hbm [shape: f32[1,1024], index: 4, kind: input, shape index: {}]   ;;  %s2562_s5 = inlined_call_operand.hbm [shape: bf16[1024,256], index: 5, kind: input, shape index: {}]   ;;  %s2563_s6 = inlined_call_operand.vmem [shape: f32[1,256], index: 6, kind: input, shape index: {}]   ;;  %s2564_s7 = inlined_call_operand.vmem [shape: bf16[256,128], index: 7, kind: input, shape index: {}]   ;;  %s2565_s8 = inlined_call_operand.vmem [shape: f32[1,128], index: 8, kind: input, shape index: {}]   ;;  %s2566_s9 = inlined_call_operand.hbm [shape: f32[2,128], index: 9, kind: output, shape index: {}]  }
   0x1   :  { %15 = vsyncpa [#allocation6], 0 }
   0x2   :  { %16 = vsyncpa [#allocation4], 0  ;;  %s2293_s30 = smov [#allocation2]   ;;  %s2294_s11 = smov [#allocation5]  }
   0x3   :  { %s31_s10 = sshll.u32 %s2293_s30, 4  ;;  %s40_s12 = sshll.u32 %s2294_s11, 4  ;;  %s32_s10 = int_to_ptr.vmem [resolvable:$true] %s31_s10  ;;  %s2350_s12 = int_to_ptr.vmem [resolvable:$true] %s40_s12 }
   0x4   :  { %s2221_s15 = scalar_lea.hbm %s2561_s4, 128 }
   0x5   :  { %p2222_p0 = scmp.ne.s32.totalorder %s2561_s4, %s2221_s15  ;;  %p2225_p1 = scmp.lt.u32.totalorder %s2221_s15, %s2561_s4 }
   0x7   :  { %p2227_p2 = pnand %p2225_p1, %p2222_p0 }
   0x9   :  { %2230 = shalt.err (!%p2227_p2)
}
   0xa   :  { %s2231_s20 = scalar_lea.vmem %s32_s10, 128  ;;  %p2236_p4 = scmp.lt.s32.totalorder %s32_s10, %s32_s10 }
   0xb   :  { %p2232_p3 = scmp.ne.s32.totalorder %s32_s10, %s2231_s20  ;;  %p2237_p5 = scmp.lt.s32.totalorder %s2231_s20, %s2231_s20 }
   0xd   :  { %p2238_p6 = por %p2237_p5, %p2236_p4 }
   0xf   :  { %p2239_p7 = pnand %p2238_p6, %p2232_p3 }
  0x11   :  { %2242 = shalt.err (!%p2239_p7)
}
  0x12   :  { %34 = dma.hbm_to_vmem [thread:$0]  %s2561_s4, 128, %s32_s10, [#allocation3]  }
  0x13   :  { %s2243_s25 = scalar_lea.hbm %s2562_s5, 16384 }
  0x14   :  { %p2244_p8 = scmp.ne.s32.totalorder %s2562_s5, %s2243_s25  ;;  %p2247_p9 = scmp.lt.u32.totalorder %s2243_s25, %s2562_s5 }
  0x16   :  { %p2249_p10 = pnand %p2247_p9, %p2244_p8 }
  0x18   :  { %2252 = shalt.err (!%p2249_p10)
}
  0x19   :  { %s2253_s30 = scalar_lea.vmem %s2350_s12, 16384  ;;  %p2258_p12 = scmp.lt.s32.totalorder %s2350_s12, %s2350_s12 }
  0x1a   :  { %p2254_p11 = scmp.ne.s32.totalorder %s2350_s12, %s2253_s30  ;;  %p2259_p13 = scmp.lt.s32.totalorder %s2253_s30, %s2253_s30 }
  0x1c   :  { %p2260_p0 = por %p2259_p13, %p2258_p12 }
  0x1e   :  { %p2261_p1 = pnand %p2260_p0, %p2254_p11 }
  0x20   :  { %2264 = shalt.err (!%p2261_p1)
}
  0x21   :  { %s2295_s4 = smov 128   ;;  %s2296_s10 = smov 8  }
  0x22   :  { %46 = dma.hbm_to_vmem [thread:$0]  %s2562_s5, 16384, %s2350_s12, [#allocation6], %s2295_s4, %s2295_s4, %s2296_s10  }
  0x23   :  { %2287 = dma.done.wait [#allocation3], 128  }
  0x24   :  { %2288 = vsyncadd [#allocation3], 4294967168 }
  0x25   :  { %2289 = dma.done.wait [#allocation6], 16384  }
  0x26   :  { %2290 = vsyncadd [#allocation6], 4294950912  ;;  %vm68_vm0 = vcmask 1043456   ;;  %v83_v0 = vld [vmem:[%s2558_s1] sm:$0xff]  ;;  %v84_v1 = vld [vmem:[%s2558_s1 + $0x8] sm:$0xff]  ;;  %v113_v20 = vlaneseq  ;;  %vm166_vm1 = vcmask 1041408  }
  0x27   :  { %v60_v2 = vld [vmem:[%s2557_s0] sm:$0xff]  ;;  %v87_v3 = vcombine.high %v83_v0, %v83_v0  ;;  %v91_v4 = vsel %vm68_vm0, %v83_v0, 0.0  ;;  %v88_v5 = vcombine.high %v84_v1, %v84_v1  ;;  %v61_v6 = vld [vmem:[%s2557_s0 + $0x8] sm:$0xff]  ;;  %v96_v11 = vsel %vm68_vm0, %v84_v1, 0.0  ;;  %s2299_s4 = smov [#allocation7]  }
  0x28   :  { %v64_v7 = vcombine.high %v60_v2, %v60_v2  ;;  %v69_v8 = vsel %vm68_vm0, %v60_v2, 0.0  ;;  %v65_v9 = vcombine.high %v61_v6, %v61_v6  ;;  %v74_v15 = vsel %vm68_vm0, %v61_v6, 0.0  ;;  %v107_v26 = vld [vmem:[%s2560_s3] sm:$0xff]  ;;  %v106_v40 = vld [vmem:[%s2559_s2 + $0x8] sm:$0xff]  ;;  %s1793_s10 = sshll.u32 %s2299_s4, 4  ;;  %s1794_s10 = int_to_ptr.vmem [resolvable:$true] %s1793_s10 }
  0x29   :  { %v92_v10 = vsel %vm68_vm0, %v87_v3, 0.0  ;;  %v97_v12 = vsel %vm68_vm0, %v88_v5, 0.0  ;;  %v2401_v21 = vshrl.u32 %v113_v20, 7  ;;  %v2297_v22 = vmov 1983009808   ;;  %v105_v31 = vld [vmem:[%s2559_s2] sm:$0xff]  ;;  %p2270_p3 = scmp.lt.s32.totalorder %s1794_s10, %s1794_s10 }
  0x2a   :  { %v93_v13 = vadd.f32 %v92_v10, %v91_v4  ;;  %v70_v14 = vsel %vm68_vm0, %v64_v7, 0.0  ;;  %v75_v16 = vsel %vm68_vm0, %v65_v9, 0.0  ;;  %v98_v18 = vadd.f32 %v97_v12, %v96_v11  ;;  %v108_v60 = vld [vmem:[%s2560_s3 + $0x8] sm:$0xff]  ;;  %s2265_s11 = scalar_lea.vmem %s1794_s10, 32 }
  0x2b   :  { %v71_v17 = vadd.f32 %v70_v14, %v69_v8  ;;  %v76_v19 = vadd.f32 %v75_v16, %v74_v15  ;;  %v130_v23 = vunpack.c.l.s4 %v2297_v22  ;;  %v128_v30 = vcombine.high %v107_v26, %v107_v26  ;;  %p2266_p2 = scmp.ne.s32.totalorder %s1794_s10, %s2265_s11  ;;  %p2271_p4 = scmp.lt.s32.totalorder %s2265_s11, %s2265_s11 }
  0x2c   :  { %94 = vadd.xlane.f32.xlu0 %v93_v13  ;;  %v371_v32 = vcombine.high %v105_v31, %v105_v31  ;;  %v2298_v34 = vmov 0   ;;  %v388_v41 = vcombine.high %v106_v40, %v106_v40  ;;  %v114_v49 = vand.u32 127, %v113_v20  ;;  %v2015_v13 = vld [vmem:[#allocation5 + $0x4] ss:$8 sps:$4 sm:$0xff]  }
  0x2d   :  { %72 = vadd.xlane.f32.xlu1 %v71_v17  ;;  %v131_v24 = vunpack.c.0.s8 %v130_v23  ;;  %223 = vmatprep.mubr.bf16.mxu0 %v2298_v34  ;;  %vm123_vm2 = vcmask 1041409   ;;  %vm162_vm3 = vcmask 31744   ;;  %v145_v10 = vcombine.high %v108_v60, %v108_v60  ;;  %v2013_v17 = vld [vmem:[#allocation5] ss:$8 sps:$4 sm:$0xff]   ;;  %v2021_v20 = vld [vmem:[#allocation5 + $0x24] ss:$8 sps:$4 sm:$0xff]   ;;  %p2272_p5 = por %p2271_p4, %p2270_p3 }
  0x2e   :  { %505 = vmatprep.mubr.bf16.mxu1 %v2298_v34  ;;  %v117_v57 = vsub.s32 %v114_v49, %v2401_v21  ;;  %v2054_v49 = vld [vmem:[#allocation5 + $0x254] ss:$8 sps:$4 sm:$0xff]  }
  0x2f   :  { %v2404_v25 = vsub.s32 %v131_v24, %v2401_v21  ;;  %v2019_v24 = vld [vmem:[#allocation5 + $0x20] ss:$8 sps:$4 sm:$0xff]   ;;  %p2273_p6 = pnand %p2272_p5, %p2266_p2 }
  0x30   :  { %99 = vadd.xlane.f32.xlu0 %v98_v18  ;;  %v2018_v18 = vld [vmem:[#allocation5 + $0x14] ss:$8 sps:$4 sm:$0xff]  }
  0x31   :  { %77 = vadd.xlane.f32.xlu1 %v76_v19  ;;  %v135_v27 = vrot.slane %v107_v26, %v2404_v25  ;;  %v142_v33 = vrot.slane %v128_v30, %v2404_v25  ;;  %v385_v35 = vrot.slane %v371_v32, %v2404_v25  ;;  %v2420_v37 = vrot.slane %v105_v31, %v2404_v25  ;;  %v2016_v19 = vld [vmem:[#allocation5 + $0x10] ss:$8 sps:$4 sm:$0xff]   ;;  %v2031_v30 = vld [vmem:[#allocation5 + $0x40] ss:$8 sps:$4 sm:$0xff]   ;;  %v2039_v31 = vld [vmem:[#allocation5 + $0x54] ss:$8 sps:$4 sm:$0xff]  }
  0x32   :  { %v402_v42 = vrot.slane %v388_v41, %v2404_v25  ;;  %v2431_v44 = vrot.slane %v106_v40, %v2404_v25  ;;  %v152_v1 = vrot.slane %v108_v60, %v2404_v25  ;;  %v159_v14 = vrot.slane %v145_v10, %v2404_v25  ;;  %v2027_v25 = vld [vmem:[#allocation5 + $0x34] ss:$8 sps:$4 sm:$0xff]   ;;  %v2025_v26 = vld [vmem:[#allocation5 + $0x30] ss:$8 sps:$4 sm:$0xff]   ;;  %v2034_v40 = vld [vmem:[#allocation5 + $0x220] ss:$8 sps:$4 sm:$0xff]  }
  0x33   :  { %v143_v28 = vcombine.high %v135_v27, %v135_v27  ;;  %v168_v29 = vsel %vm166_vm1, %v135_v27, 0  ;;  %v144_v36 = vcombine.high %v142_v33, %v142_v33  ;;  %v387_v38 = vcombine.high %v385_v35, %v385_v35  ;;  %v2033_v27 = vld [vmem:[#allocation5 + $0x44] ss:$8 sps:$4 sm:$0xff]   ;;  %v2037_v32 = vld [vmem:[#allocation5 + $0x50] ss:$8 sps:$4 sm:$0xff]  }
  0x34   :  { %v415_v39 = vsel %vm166_vm1, %v385_v35, 0  ;;  %v404_v43 = vcombine.high %v402_v42, %v402_v42  ;;  %v174_v6 = vsel %vm166_vm1, %v142_v33, 0  ;;  %v160_v9 = vcombine.high %v152_v1, %v152_v1  ;;  %v2024_v35 = vld [vmem:[#allocation5 + $0x204] ss:$8 sps:$4 sm:$0xff]   ;;  %v2042_v41 = vld [vmem:[#allocation5 + $0x234] ss:$8 sps:$4 sm:$0xff]  }
  0x35   :  { %1803 = vmatprep.subr.msk.bf16.mxu0 %vm166_vm1, %v143_v28  ;;  %1813 = vmatprep.subr.msk.bf16.mxu1 %vm166_vm1, %v387_v38  ;;  %v427_v12 = vsel %vm166_vm1, %v402_v42, 0  ;;  %v180_v15 = vsel %vm166_vm1, %v152_v1, 0  ;;  %v161_v16 = vcombine.high %v159_v14, %v159_v14  ;;  %v186_v22 = vsel %vm166_vm1, %v159_v14, 0  ;;  %v2028_v38 = vld [vmem:[#allocation5 + $0x210] ss:$8 sps:$4 sm:$0xff]  }
  0x36   :  { %192 = vmatpush1.bf16.msra.mxu0 %v168_v29  ;;  %474 = vmatpush1.bf16.msra.mxu1 %v415_v39  ;;  %v386_v23 = vcombine.high %v2420_v37, %v2420_v37  ;;  %v409_v28 = vsel %vm166_vm1, %v2420_v37, 0  ;;  %v403_v29 = vcombine.high %v2431_v44, %v2431_v44  ;;  %v421_v33 = vsel %vm166_vm1, %v2431_v44, 0  ;;  %v2030_v37 = vld [vmem:[#allocation5 + $0x214] ss:$8 sps:$4 sm:$0xff]   ;;  %v2036_v39 = vld [vmem:[#allocation5 + $0x224] ss:$8 sps:$4 sm:$0xff]  }
  0x37   :  { %1805 = vmatprep.subr.msk.bf16.mxu0 %vm166_vm1, %v144_v36  ;;  %1817 = vmatprep.subr.msk.bf16.mxu1 %vm166_vm1, %v404_v43  ;;  %v2022_v36 = vld [vmem:[#allocation5 + $0x200] ss:$8 sps:$4 sm:$0xff]   ;;  %v2040_v42 = vld [vmem:[#allocation5 + $0x230] ss:$8 sps:$4 sm:$0xff]   ;;  %v2045_v43 = vld [vmem:[#allocation5 + $0x64] ss:$8 sps:$4 sm:$0xff]  }
  0x38   :  { %v2048_v44 = vld [vmem:[#allocation5 + $0x244] ss:$8 sps:$4 sm:$0xff]   ;;  %v2067_v60 = vld [vmem:[#allocation5 + $0xa0] ss:$8 sps:$4 sm:$0xff]   ;;  %v2078_v1 = vld [vmem:[#allocation5 + $0x294] ss:$8 sps:$4 sm:$0xff]  }
  0x39   :  { %v2093_v10 = vld [vmem:[#allocation5 + $0xe4] ss:$8 sps:$4 sm:$0xff]   ;;  %v2099_v14 = vld [vmem:[#allocation5 + $0xf4] ss:$8 sps:$4 sm:$0xff]  }
  0xb9   :  { %v95_v45 = vpop.xlane.xlu0 %94 }
  0xba   :  { %v101_v46 = vmul.f32 0.00390625, %v95_v45  ;;  %v73_v47 = vpop.xlane.xlu1 %72  ;;  %v2046_v45 = vld [vmem:[#allocation5 + $0x240] ss:$8 sps:$4 sm:$0xff]  }
  0xbb   :  { %v79_v48 = vmul.f32 0.00390625, %v73_v47  ;;  %v2051_v47 = vld [vmem:[#allocation5 + $0x74] ss:$8 sps:$4 sm:$0xff]  }
  0xbc   :  { %v103_v50 = vpack.c.bf16 %v101_v46, %v101_v46  ;;  %v2049_v46 = vld [vmem:[#allocation5 + $0x70] ss:$8 sps:$4 sm:$0xff]  }
  0xbd   :  { %v100_v51 = vpop.xlane.xlu0 %99  ;;  %v81_v52 = vpack.c.bf16 %v79_v48, %v79_v48  ;;  %v2052_v48 = vld [vmem:[#allocation5 + $0x250] ss:$8 sps:$4 sm:$0xff]  }
  0xbe   :  { %v102_v53 = vmul.f32 0.00390625, %v100_v51  ;;  %v78_v54 = vpop.xlane.xlu1 %77  ;;  %v111_v58 = vunpack.c.l.b16 %v103_v50  ;;  %v2057_v50 = vld [vmem:[#allocation5 + $0x84] ss:$8 sps:$4 sm:$0xff]  }
  0xbf   :  { %v357_v55 = vunpack.c.l.b16 %v81_v52  ;;  %v80_v56 = vmul.f32 0.00390625, %v78_v54  ;;  %v2060_v51 = vld [vmem:[#allocation5 + $0x264] ss:$8 sps:$4 sm:$0xff]   ;;  %v2055_v52 = vld [vmem:[#allocation5 + $0x80] ss:$8 sps:$4 sm:$0xff]  }
  0xc0   :  { %v104_v59 = vpack.c.bf16 %v102_v53, %v102_v53  ;;  %v118_v2 = vrot.slane %v111_v58, %v117_v57  ;;  %v2058_v53 = vld [vmem:[#allocation5 + $0x260] ss:$8 sps:$4 sm:$0xff]   ;;  %v2063_v54 = vld [vmem:[#allocation5 + $0x94] ss:$8 sps:$4 sm:$0xff]   ;;  %v2069_v58 = vld [vmem:[#allocation5 + $0xa4] ss:$8 sps:$4 sm:$0xff]  }
  0xc1   :  { %v82_v61 = vpack.c.bf16 %v80_v56, %v80_v56  ;;  %v362_v63 = vrot.slane %v357_v55, %v117_v57  ;;  %v2066_v55 = vld [vmem:[#allocation5 + $0x274] ss:$8 sps:$4 sm:$0xff]   ;;  %v2061_v56 = vld [vmem:[#allocation5 + $0x90] ss:$8 sps:$4 sm:$0xff]  }
  0xc2   :  { %v112_v62 = vunpack.c.l.b16 %v104_v59  ;;  %v2072_v59 = vld [vmem:[#allocation5 + $0x284] ss:$8 sps:$4 sm:$0xff]  }
  0xc3   :  { %v358_v0 = vunpack.c.l.b16 %v82_v61  ;;  %v2070_v61 = vld [vmem:[#allocation5 + $0x280] ss:$8 sps:$4 sm:$0xff]  }
  0xc4   :  { %v122_v3 = vrot.slane %v112_v62, %v117_v57  ;;  %v2073_v62 = vld [vmem:[#allocation5 + $0xb0] ss:$8 sps:$4 sm:$0xff]  }
  0xc5   :  { %v366_v4 = vrot.slane %v358_v0, %v117_v57  ;;  %v2064_v57 = vld [vmem:[#allocation5 + $0x270] ss:$8 sps:$4 sm:$0xff]  }
  0xc6   :  { %v124_v5 = vsel %vm123_vm2, %v122_v3, %v118_v2  ;;  %v2076_v0 = vld [vmem:[#allocation5 + $0x290] ss:$8 sps:$4 sm:$0xff]   ;;  %v2081_v2 = vld [vmem:[#allocation5 + $0xc4] ss:$8 sps:$4 sm:$0xff]  }
  0xc7   :  { %v367_v7 = vsel %vm123_vm2, %v366_v4, %v362_v63  ;;  %v125_v8 = vpack.c.b16 %v124_v5, %v124_v5  ;;  %v2075_v63 = vld [vmem:[#allocation5 + $0xb4] ss:$8 sps:$4 sm:$0xff]   ;;  %v2084_v3 = vld [vmem:[#allocation5 + $0x2a4] ss:$8 sps:$4 sm:$0xff]   ;;  %v2079_v4 = vld [vmem:[#allocation5 + $0xc0] ss:$8 sps:$4 sm:$0xff]  }
  0xc8   :  { %v368_v11 = vpack.c.b16 %v367_v7, %v367_v7  ;;  %v2082_v5 = vld [vmem:[#allocation5 + $0x2a0] ss:$8 sps:$4 sm:$0xff]   ;;  %v2090_v7 = vld [vmem:[#allocation5 + $0x2b4] ss:$8 sps:$4 sm:$0xff]  }
  0xc9   :  { %1804 = vmatmul.mubr.msk.bf16.vlgmr.msra.gmra.mrb[0].mxu0 %vm162_vm3, %v125_v8 }
  0xca   :  { %233 = vmatpush1.bf16.msra.mxu0 %v174_v6  ;;  %264 = vmatprep.mubr.bf16.mxu0 %v2298_v34  ;;  %v2087_v6 = vld [vmem:[#allocation5 + $0xd4] ss:$8 sps:$4 sm:$0xff]  }
  0xcb   :  { %1807 = vmatprep.subr.msk.bf16.mxu0 %vm166_vm1, %v160_v9  ;;  %1814 = vmatmul.mubr.msk.bf16.vlgmr.msra.gmra.mrb[0].mxu1 %vm162_vm3, %v368_v11  ;;  %v2088_v9 = vld [vmem:[#allocation5 + $0x2b0] ss:$8 sps:$4 sm:$0xff]  }
  0xcc   :  { %556 = vmatpush1.bf16.msra.mxu1 %v427_v12  ;;  %587 = vmatprep.mubr.bf16.mxu1 %v2298_v34  ;;  %v2091_v12 = vld [vmem:[#allocation5 + $0xe0] ss:$8 sps:$4 sm:$0xff]  }
  0xcd   :  { %1442 = vmatprep.subr.bf16.mxu1 %v2015_v13  ;;  %v2094_v13 = vld [vmem:[#allocation5 + $0x2c0] ss:$8 sps:$4 sm:$0xff]  }
  0xd1   :  { %1806 = vmatmul.mubr.msk.bf16.vlgmr.msra.gmra.mrb[4].mxu0 %vm162_vm3, %v125_v8 }
  0xd2   :  { %274 = vmatpush1.bf16.msra.mxu0 %v180_v15  ;;  %305 = vmatprep.mubr.bf16.mxu0 %v2298_v34  ;;  %v2102_v15 = vld [vmem:[#allocation5 + $0x2d4] ss:$8 sps:$4 sm:$0xff]  }
  0xd3   :  { %1809 = vmatprep.subr.msk.bf16.mxu0 %vm166_vm1, %v161_v16  ;;  %1818 = vmatmul.mubr.msk.bf16.vlgmr.msra.gmra.mrb[4].mxu1 %vm162_vm3, %v368_v11  ;;  %v2097_v16 = vld [vmem:[#allocation5 + $0xf0] ss:$8 sps:$4 sm:$0xff]  }
  0xd4   :  { %1443 = vmatpush1.bf16.msra.mxu1 %v2013_v17  ;;  %v2100_v17 = vld [vmem:[#allocation5 + $0x2d0] ss:$8 sps:$4 sm:$0xff]  }
  0xd5   :  { %1444 = vmatprep.subr.bf16.mxu1 %v2018_v18  ;;  %v2105_v18 = vld [vmem:[#allocation5 + $0x104] ss:$8 sps:$4 sm:$0xff]  }
  0xd8   :  { %1445 = vmatpush1.bf16.msra.mxu1 %v2016_v19  ;;  %v2108_v19 = vld [vmem:[#allocation5 + $0x2e4] ss:$8 sps:$4 sm:$0xff]  }
  0xd9   :  { %1808 = vmatmul.mubr.msk.bf16.vlgmr.msra.gmra.mrb[8].mxu0 %vm162_vm3, %v125_v8  ;;  %1446 = vmatprep.subr.bf16.mxu1 %v2021_v20  ;;  %v2106_v20 = vld [vmem:[#allocation5 + $0x2e0] ss:$8 sps:$4 sm:$0xff]  }
  0xda   :  { %315 = vmatpush1.bf16.msra.mxu0 %v186_v22  ;;  %346 = vmatprep.mubr.bf16.mxu0 %v2298_v34  ;;  %v2114_v22 = vld [vmem:[#allocation5 + $0x2f4] ss:$8 sps:$4 sm:$0xff]  }
  0xdb   :  { %1811 = vmatprep.subr.msk.bf16.mxu0 %vm166_vm1, %v386_v23  ;;  %v2112_v23 = vld [vmem:[#allocation5 + $0x2f0] ss:$8 sps:$4 sm:$0xff]  }
  0xdc   :  { %1447 = vmatpush1.bf16.msra.mxu1 %v2019_v24  ;;  %v2120_v24 = vld [vmem:[#allocation5 + $0x304] ss:$8 sps:$4 sm:$0xff]  }
  0xdd   :  { %1448 = vmatprep.subr.bf16.mxu1 %v2027_v25 }
  0xe0   :  { %1449 = vmatpush1.bf16.msra.mxu1 %v2025_v26 }
  0xe1   :  { %1810 = vmatmul.mubr.msk.bf16.vlgmr.msra.gmra.mrb[12].mxu0 %vm162_vm3, %v125_v8  ;;  %1450 = vmatprep.subr.bf16.mxu1 %v2033_v27  ;;  %v2085_v8 = vld [vmem:[#allocation5 + $0xd0] ss:$8 sps:$4 sm:$0xff]  }
  0xe2   :  { %433 = vmatpush1.bf16.msra.mxu0 %v409_v28  ;;  %464 = vmatprep.mubr.bf16.mxu0 %v2298_v34 }
  0xe3   :  { %1815 = vmatprep.subr.msk.bf16.mxu0 %vm166_vm1, %v403_v29 }
  0xe4   :  { %1451 = vmatpush1.bf16.msra.mxu1 %v2031_v30  ;;  %v608_v30 = vsub.s32 2, %v2401_v21 }
  0xe5   :  { %1452 = vmatprep.subr.bf16.mxu1 %v2039_v31 }
  0xe8   :  { %1453 = vmatpush1.bf16.msra.mxu1 %v2037_v32  ;;  %v596_v32 = vld [vmem:[#allocation2] sm:$0xff] }
  0xe9   :  { %1812 = vmatmul.mubr.msk.bf16.vlgmr.msra.gmra.mrb[16].mxu0 %vm162_vm3, %v368_v11  ;;  %1454 = vmatprep.subr.bf16.mxu1 %v2045_v43 }
  0xea   :  { %515 = vmatpush1.bf16.msra.mxu0 %v421_v33  ;;  %546 = vmatprep.mubr.bf16.mxu0 %v2298_v34  ;;  %v2043_v34 = vld [vmem:[#allocation5 + $0x60] ss:$8 sps:$4 sm:$0xff]  }
  0xeb   :  { %1524 = vmatprep.subr.bf16.mxu0 %v2024_v35 }
  0xec   :  { %1455 = vmatpush1.bf16.msra.mxu1 %v2043_v34 }
  0xed   :  { %1456 = vmatprep.subr.bf16.mxu1 %v2051_v47 }
  0xf0   :  { %1457 = vmatpush1.bf16.msra.mxu1 %v2049_v46 }
  0xf1   :  { %1816 = vmatmul.mubr.msk.bf16.vlgmr.msra.gmra.mrb[20].mxu0 %vm162_vm3, %v368_v11  ;;  %1458 = vmatprep.subr.bf16.mxu1 %v2057_v50  ;;  %v2096_v11 = vld [vmem:[#allocation5 + $0x2c4] ss:$8 sps:$4 sm:$0xff]  }
  0xf2   :  { %1525 = vmatpush1.bf16.msra.mxu0 %v2022_v36  ;;  %v609_v36 = vrot.slane %v596_v32, %v608_v30 }
  0xf3   :  { %1526 = vmatprep.subr.bf16.mxu0 %v2030_v37 }
  0xf4   :  { %1459 = vmatpush1.bf16.msra.mxu1 %v2055_v52 }
  0xf5   :  { %1460 = vmatprep.subr.bf16.mxu1 %v2063_v54 }
  0xf6   :  { %1527 = vmatpush1.bf16.msra.mxu0 %v2028_v38 }
  0xf7   :  { %1528 = vmatprep.subr.bf16.mxu0 %v2036_v39 }
  0xf8   :  { %1461 = vmatpush1.bf16.msra.mxu1 %v2061_v56  ;;  %v612_v56 = vsub.s32 3, %v2401_v21 }
  0xf9   :  { %1462 = vmatprep.subr.bf16.mxu1 %v2069_v58 }
  0xfa   :  { %1529 = vmatpush1.bf16.msra.mxu0 %v2034_v40 }
  0xfb   :  { %1530 = vmatprep.subr.bf16.mxu0 %v2042_v41 }
  0xfc   :  { %1463 = vmatpush1.bf16.msra.mxu1 %v2067_v60 }
  0xfd   :  { %1464 = vmatprep.subr.bf16.mxu1 %v2075_v63  ;;  %v613_v63 = vrot.slane %v596_v32, %v612_v56  ;;  %v2133_v56 = vld [vmem:[#allocation5 + $0x150] ss:$8 sps:$4 sm:$0xff]  }
  0xfe   :  { %1531 = vmatpush1.bf16.msra.mxu0 %v2040_v42 }
  0xff   :  { %1532 = vmatprep.subr.bf16.mxu0 %v2048_v44 }
 0x100   :  { %1465 = vmatpush1.bf16.msra.mxu1 %v2073_v62  ;;  %v604_v62 = vsub.s32 1, %v2401_v21 }
 0x101   :  { %1466 = vmatprep.subr.bf16.mxu1 %v2081_v2 }
 0x102   :  { %1533 = vmatpush1.bf16.msra.mxu0 %v2046_v45  ;;  %v605_v2 = vrot.slane %v596_v32, %v604_v62 }
 0x103   :  { %1534 = vmatprep.subr.bf16.mxu0 %v2054_v49 }
 0x104   :  { %1467 = vmatpush1.bf16.msra.mxu1 %v2079_v4 }
 0x105   :  { %1468 = vmatprep.subr.bf16.mxu1 %v2087_v6 }
 0x106   :  { %1535 = vmatpush1.bf16.msra.mxu0 %v2052_v48 }
 0x107   :  { %1536 = vmatprep.subr.bf16.mxu0 %v2060_v51  ;;  %v624_v51 = vsub.s32 6, %v2401_v21 }
 0x108   :  { %1469 = vmatpush1.bf16.msra.mxu1 %v2085_v8  ;;  %v628_v8 = vsub.s32 7, %v2401_v21 }
 0x109   :  { %1470 = vmatprep.subr.bf16.mxu1 %v2093_v10  ;;  %v625_v52 = vrot.slane %v596_v32, %v624_v51  ;;  %v2132_v51 = vld [vmem:[#allocation5 + $0x324] ss:$8 sps:$4 sm:$0xff]  }
 0x10a   :  { %1537 = vmatpush1.bf16.msra.mxu0 %v2058_v53 }
 0x10b   :  { %1538 = vmatprep.subr.bf16.mxu0 %v2066_v55 }
 0x10c   :  { %1471 = vmatpush1.bf16.msra.mxu1 %v2091_v12 }
 0x10d   :  { %1472 = vmatprep.subr.bf16.mxu1 %v2099_v14 }
 0x10e   :  { %1539 = vmatpush1.bf16.msra.mxu0 %v2064_v57 }
 0x10f   :  { %1540 = vmatprep.subr.bf16.mxu0 %v2072_v59 }
 0x110   :  { %1473 = vmatpush1.bf16.msra.mxu1 %v2097_v16 }
 0x111   :  { %1483 = vmatprep.subr.bf16.mxu1 %v2105_v18 }
 0x112   :  { %1541 = vmatpush1.bf16.msra.mxu0 %v2070_v61  ;;  %v600_v61 = vsub.s32 0, %v2401_v21 }
 0x113   :  { %1542 = vmatprep.subr.bf16.mxu0 %v2078_v1 }
 0x116   :  { %1543 = vmatpush1.bf16.msra.mxu0 %v2076_v0  ;;  %v601_v0 = vrot.slane %v596_v32, %v600_v61 }
 0x117   :  { %1544 = vmatprep.subr.bf16.mxu0 %v2084_v3 }
 0x11a   :  { %1545 = vmatpush1.bf16.msra.mxu0 %v2082_v5 }
 0x11b   :  { %1546 = vmatprep.subr.bf16.mxu0 %v2090_v7 }
 0x11e   :  { %1547 = vmatpush1.bf16.msra.mxu0 %v2088_v9 }
 0x11f   :  { %1548 = vmatprep.subr.bf16.mxu0 %v2096_v11  ;;  %v616_v11 = vsub.s32 4, %v2401_v21 }
 0x121   :  { %v617_v18 = vrot.slane %v596_v32, %v616_v11  ;;  %v2157_v11 = vld [vmem:[#allocation5 + $0x190] ss:$8 sps:$4 sm:$0xff]  }
 0x122   :  { %1549 = vmatpush1.bf16.msra.mxu0 %v2094_v13  ;;  %v620_v13 = vsub.s32 5, %v2401_v21  ;;  %v1947_v21 = vld [vmem:[%s2565_s8] ss:$0 sm:$0xff] }
 0x123   :  { %1550 = vmatprep.subr.bf16.mxu0 %v2102_v15 }
 0x126   :  { %1551 = vmatpush1.bf16.msra.mxu0 %v2100_v17  ;;  %v629_v17 = vrot.slane %v596_v32, %v628_v8  ;;  %v2154_v8 = vld [vmem:[#allocation5 + $0x360] ss:$8 sps:$4 sm:$0xff]  }
 0x127   :  { %1552 = vmatprep.subr.bf16.mxu0 %v2108_v19 }
 0x12a   :  { %1553 = vmatpush1.bf16.msra.mxu0 %v2106_v20 }
 0x12b   :  { %1554 = vmatprep.subr.bf16.mxu0 %v2114_v22  ;;  %v621_v22 = vrot.slane %v596_v32, %v620_v13  ;;  %v2117_v32 = vld [vmem:[#allocation5 + $0x124] ss:$8 sps:$4 sm:$0xff]  }
 0x12c   :  { %v2165_v13 = vld [vmem:[#allocation5 + $0x1a4] ss:$8 sps:$4 sm:$0xff]  }
 0x12e   :  { %1555 = vmatpush1.bf16.msra.mxu0 %v2112_v23  ;;  %v2103_v23 = vld [vmem:[#allocation5 + $0x100] ss:$8 sps:$4 sm:$0xff]  }
 0x12f   :  { %1565 = vmatprep.subr.bf16.mxu0 %v2120_v24 }
 0x19c   :  { %v225_v25 = vpop.f32.mrb[0].mxu0 }
 0x19d   :  { %v227_v26 = vpop.f32.mrb[1].mxu0 }
 0x19e   :  { %v229_v27 = vpop.f32.mrb[2].mxu0  ;;  %v507_v28 = vpop.f32.mrb[0].mxu1 }
 0x19f   :  { %v230_v29 = vpop.f32.mrb[3].mxu0  ;;  %v509_v31 = vpop.f32.mrb[1].mxu1  ;;  %v2111_v27 = vld [vmem:[#allocation5 + $0x114] ss:$8 sps:$4 sm:$0xff]  }
 0x1a0   :  { %v511_v33 = vpop.f32.mrb[2].mxu1 }
 0x1a1   :  { %v512_v35 = vpop.f32.mrb[3].mxu1 }
 0x1a4   :  { %v266_v37 = vpop.f32.mrb[4].mxu0 }
 0x1a5   :  { %v508_v38 = vadd.f32 %v507_v28, %v266_v37  ;;  %v268_v39 = vpop.f32.mrb[5].mxu0  ;;  %v2109_v37 = vld [vmem:[#allocation5 + $0x110] ss:$8 sps:$4 sm:$0xff]  }
 0x1a6   :  { %v510_v40 = vadd.f32 %v509_v31, %v268_v39  ;;  %v270_v41 = vpop.f32.mrb[6].mxu0  ;;  %v589_v42 = vpop.f32.mrb[4].mxu1 }
 0x1a7   :  { %v2470_v43 = vadd.f32 %v609_v36, %v508_v38  ;;  %v271_v44 = vpop.f32.mrb[7].mxu0  ;;  %v591_v34 = vpop.f32.mrb[5].mxu1 }
 0x1a8   :  { %v593_v45 = vpop.f32.mrb[6].mxu1  ;;  %v641_v5 = vadd.f32 %v613_v63, %v510_v40  ;;  %v2118_v44 = vld [vmem:[#allocation5 + $0x300] ss:$8 sps:$4 sm:$0xff]  }
 0x1a9   :  { %v594_v46 = vpop.f32.mrb[7].mxu1  ;;  %v2123_v45 = vld [vmem:[#allocation5 + $0x134] ss:$8 sps:$4 sm:$0xff]   ;;  %v2139_v63 = vld [vmem:[#allocation5 + $0x160] ss:$8 sps:$4 sm:$0xff]  }
 0x1aa   :  { %v649_v15 = vmax.f32 %v641_v5, 0.0  ;;  %v2126_v46 = vld [vmem:[#allocation5 + $0x314] ss:$8 sps:$4 sm:$0xff]   ;;  %v2153_v5 = vld [vmem:[#allocation5 + $0x184] ss:$8 sps:$4 sm:$0xff]  }
 0x1ac   :  { %v307_v47 = vpop.f32.mrb[8].mxu0  ;;  %v657_v28 = vpack.c.bf16 %v649_v15, %v649_v15  ;;  %v2163_v15 = vld [vmem:[#allocation5 + $0x1a0] ss:$8 sps:$4 sm:$0xff]  }
 0x1ad   :  { %v309_v48 = vpop.f32.mrb[9].mxu0 }
 0x1ae   :  { %v311_v49 = vpop.f32.mrb[10].mxu0 }
 0x1af   :  { %v312_v50 = vpop.f32.mrb[11].mxu0  ;;  %v2124_v49 = vld [vmem:[#allocation5 + $0x310] ss:$8 sps:$4 sm:$0xff]  }
 0x1b0   :  { %v2129_v50 = vld [vmem:[#allocation5 + $0x144] ss:$8 sps:$4 sm:$0xff]  }
 0x1b4   :  { %v348_v53 = vpop.f32.mrb[12].mxu0 }
 0x1b5   :  { %v590_v54 = vadd.f32 %v589_v42, %v348_v53  ;;  %v350_v55 = vpop.f32.mrb[13].mxu0  ;;  %v2115_v42 = vld [vmem:[#allocation5 + $0x120] ss:$8 sps:$4 sm:$0xff]  }
 0x1b6   :  { %v592_v57 = vadd.f32 %v591_v34, %v350_v55  ;;  %v352_v58 = vpop.f32.mrb[14].mxu0  ;;  %v2130_v53 = vld [vmem:[#allocation5 + $0x320] ss:$8 sps:$4 sm:$0xff]   ;;  %v2138_v55 = vld [vmem:[#allocation5 + $0x334] ss:$8 sps:$4 sm:$0xff]  }
 0x1b7   :  { %v2474_v59 = vadd.f32 %v625_v52, %v590_v54  ;;  %v353_v60 = vpop.f32.mrb[15].mxu0  ;;  %v2127_v52 = vld [vmem:[#allocation5 + $0x140] ss:$8 sps:$4 sm:$0xff]   ;;  %v2135_v54 = vld [vmem:[#allocation5 + $0x154] ss:$8 sps:$4 sm:$0xff]  }
 0x1b8   :  { %v645_v31 = vadd.f32 %v629_v17, %v592_v57  ;;  %v2136_v57 = vld [vmem:[#allocation5 + $0x330] ss:$8 sps:$4 sm:$0xff]   ;;  %v2141_v58 = vld [vmem:[#allocation5 + $0x164] ss:$8 sps:$4 sm:$0xff]   ;;  %v2171_v17 = vld [vmem:[#allocation5 + $0x1b4] ss:$8 sps:$4 sm:$0xff]  }
 0x1b9   :  { %v2144_v60 = vld [vmem:[#allocation5 + $0x344] ss:$8 sps:$4 sm:$0xff]  }
 0x1ba   :  { %v653_v40 = vmax.f32 %v645_v31, 0.0  ;;  %v2192_v31 = vld [vmem:[#allocation5 + $0x3c4] ss:$8 sps:$4 sm:$0xff]  }
 0x1bc   :  { %v466_v1 = vpop.f32.mrb[16].mxu0 }
 0x1bd   :  { %v467_v3 = vadd.f32 %v466_v1, %v225_v25  ;;  %v468_v4 = vpop.f32.mrb[17].mxu0  ;;  %v2147_v1 = vld [vmem:[#allocation5 + $0x174] ss:$8 sps:$4 sm:$0xff]  }
 0x1be   :  { %v469_v6 = vadd.f32 %v468_v4, %v227_v26  ;;  %v470_v7 = vpop.f32.mrb[18].mxu0  ;;  %v2148_v4 = vld [vmem:[#allocation5 + $0x350] ss:$8 sps:$4 sm:$0xff]  }
 0x1bf   :  { %v638_v9 = vadd.f32 %v601_v0, %v467_v3  ;;  %v471_v10 = vpop.f32.mrb[19].mxu0  ;;  %v2142_v0 = vld [vmem:[#allocation5 + $0x340] ss:$8 sps:$4 sm:$0xff]   ;;  %v2145_v3 = vld [vmem:[#allocation5 + $0x170] ss:$8 sps:$4 sm:$0xff]  }
 0x1c0   :  { %v639_v12 = vadd.f32 %v605_v2, %v469_v6  ;;  %v2150_v2 = vld [vmem:[#allocation5 + $0x354] ss:$8 sps:$4 sm:$0xff]   ;;  %v2156_v6 = vld [vmem:[#allocation5 + $0x364] ss:$8 sps:$4 sm:$0xff]   ;;  %v2151_v7 = vld [vmem:[#allocation5 + $0x180] ss:$8 sps:$4 sm:$0xff]  }
 0x1c1   :  { %v646_v14 = vmax.f32 %v638_v9, 0.0  ;;  %v2159_v9 = vld [vmem:[#allocation5 + $0x194] ss:$8 sps:$4 sm:$0xff]  }
 0x1c2   :  { %v647_v16 = vmax.f32 %v639_v12, 0.0  ;;  %v2162_v10 = vld [vmem:[#allocation5 + $0x374] ss:$8 sps:$4 sm:$0xff]   ;;  %v2160_v12 = vld [vmem:[#allocation5 + $0x370] ss:$8 sps:$4 sm:$0xff]  }
 0x1c3   :  { %v654_v24 = vpack.c.bf16 %v646_v14, %v646_v14  ;;  %v2168_v14 = vld [vmem:[#allocation5 + $0x384] ss:$8 sps:$4 sm:$0xff]  }
 0x1c4   :  { %v655_v19 = vpack.c.bf16 %v647_v16, %v647_v16  ;;  %v548_v20 = vpop.f32.mrb[20].mxu0  ;;  %v2166_v16 = vld [vmem:[#allocation5 + $0x380] ss:$8 sps:$4 sm:$0xff]  }
 0x1c5   :  { %v549_v25 = vadd.f32 %v548_v20, %v307_v47  ;;  %v550_v26 = vpop.f32.mrb[21].mxu0  ;;  %v661_v47 = vpack.c.bf16 %v653_v40, %v653_v40  ;;  %v2172_v20 = vld [vmem:[#allocation5 + $0x390] ss:$8 sps:$4 sm:$0xff]   ;;  %v2201_v40 = vld [vmem:[#allocation5 + $0x3e4] ss:$8 sps:$4 sm:$0xff]  }
 0x1c6   :  { %v551_v29 = vadd.f32 %v550_v26, %v309_v48  ;;  %v552_v30 = vpop.f32.mrb[22].mxu0  ;;  %1474 = vmatprep.mubr.bf16.mxu1 %v655_v19  ;;  %v2121_v48 = vld [vmem:[#allocation5 + $0x130] ss:$8 sps:$4 sm:$0xff]   ;;  %v2183_v26 = vld [vmem:[#allocation5 + $0x1d4] ss:$8 sps:$4 sm:$0xff]  }
 0x1c7   :  { %v642_v33 = vadd.f32 %v617_v18, %v549_v25  ;;  %v553_v35 = vpop.f32.mrb[23].mxu0  ;;  %1475 = vmatmul.mubr.bf16.vlgmr.msra.gmra.mrb[8].mxu1 %v654_v24  ;;  %v2174_v18 = vld [vmem:[#allocation5 + $0x394] ss:$8 sps:$4 sm:$0xff]   ;;  %v2169_v19 = vld [vmem:[#allocation5 + $0x1b0] ss:$8 sps:$4 sm:$0xff]  }
 0x1c8   :  { %v643_v36 = vadd.f32 %v621_v22, %v551_v29  ;;  %1484 = vmatpush1.bf16.msra.mxu1 %v2103_v23  ;;  %1515 = vmatprep.mubr.bf16.mxu1 %v657_v28  ;;  %v2177_v22 = vld [vmem:[#allocation5 + $0x1c4] ss:$8 sps:$4 sm:$0xff]   ;;  %v2175_v24 = vld [vmem:[#allocation5 + $0x1c0] ss:$8 sps:$4 sm:$0xff]   ;;  %v2181_v28 = vld [vmem:[#allocation5 + $0x1d0] ss:$8 sps:$4 sm:$0xff]  }
 0x1c9   :  { %v650_v38 = vmax.f32 %v642_v33, 0.0  ;;  %1485 = vmatprep.subr.bf16.mxu1 %v2111_v27  ;;  %v2180_v23 = vld [vmem:[#allocation5 + $0x3a4] ss:$8 sps:$4 sm:$0xff]   ;;  %v2178_v25 = vld [vmem:[#allocation5 + $0x3a0] ss:$8 sps:$4 sm:$0xff]  }
 0x1ca   :  { %v651_v39 = vmax.f32 %v643_v36, 0.0  ;;  %v2186_v27 = vld [vmem:[#allocation5 + $0x3b4] ss:$8 sps:$4 sm:$0xff]   ;;  %v2184_v29 = vld [vmem:[#allocation5 + $0x3b0] ss:$8 sps:$4 sm:$0xff]  }
 0x1cb   :  { %v658_v34 = vpack.c.bf16 %v650_v38, %v650_v38  ;;  %v2189_v30 = vld [vmem:[#allocation5 + $0x1e4] ss:$8 sps:$4 sm:$0xff]   ;;  %v2187_v33 = vld [vmem:[#allocation5 + $0x1e0] ss:$8 sps:$4 sm:$0xff]   ;;  %v2195_v36 = vld [vmem:[#allocation5 + $0x1f4] ss:$8 sps:$4 sm:$0xff]  }
 0x1cc   :  { %v659_v41 = vpack.c.bf16 %v651_v39, %v651_v39  ;;  %1486 = vmatpush1.bf16.msra.mxu1 %v2109_v37  ;;  %v2190_v35 = vld [vmem:[#allocation5 + $0x3c0] ss:$8 sps:$4 sm:$0xff]   ;;  %v2198_v37 = vld [vmem:[#allocation5 + $0x3d4] ss:$8 sps:$4 sm:$0xff]   ;;  %v2193_v38 = vld [vmem:[#allocation5 + $0x1f0] ss:$8 sps:$4 sm:$0xff]  }
 0x1cd   :  { %1487 = vmatprep.subr.bf16.mxu1 %v2117_v32  ;;  %v2196_v32 = vld [vmem:[#allocation5 + $0x3d0] ss:$8 sps:$4 sm:$0xff]   ;;  %v648_v39 = vmax.f32 %v2470_v43, 0.0  ;;  %v2207_v43 = vld [vmem:[%s2564_s7 + $0x48] sm:$0xff]  }
 0x1ce   :  { %1556 = vmatprep.mubr.bf16.mxu0 %v659_v41  ;;  %v2205_v41 = vld [vmem:[%s2564_s7 + $0x40] sm:$0xff]  }
 0x1cf   :  { %1557 = vmatmul.mubr.bf16.vlgmr.msra.gmra.mrb[24].mxu0 %v658_v34  ;;  %v656_v34 = vpack.c.bf16 %v648_v39, %v648_v39 }
 0x1d0   :  { %1488 = vmatpush1.bf16.msra.mxu1 %v2115_v42  ;;  %1566 = vmatpush1.bf16.msra.mxu0 %v2118_v44  ;;  %v2199_v42 = vld [vmem:[#allocation5 + $0x3e0] ss:$8 sps:$4 sm:$0xff]   ;;  %v2206_v44 = vld [vmem:[%s2564_s7] sm:$0xff]  }
 0x1d1   :  { %1597 = vmatprep.mubr.bf16.mxu0 %v661_v47  ;;  %1489 = vmatprep.subr.bf16.mxu1 %v2123_v45  ;;  %v2204_v45 = vld [vmem:[#allocation5 + $0x3f4] ss:$8 sps:$4 sm:$0xff]   ;;  %v2208_v47 = vld [vmem:[%s2564_s7 + $0x8] sm:$0xff]  }
 0x1d2   :  { %1567 = vmatprep.subr.bf16.mxu0 %v2126_v46  ;;  %v2202_v46 = vld [vmem:[#allocation5 + $0x3f0] ss:$8 sps:$4 sm:$0xff]  }
 0x1d4   :  { %1490 = vmatpush1.bf16.msra.mxu1 %v2121_v48  ;;  %1568 = vmatpush1.bf16.msra.mxu0 %v2124_v49  ;;  %v652_v48 = vmax.f32 %v2474_v59, 0.0  ;;  %v2209_v49 = vld [vmem:[%s2564_s7 + $0x50] sm:$0xff]   ;;  %v2212_v59 = vld [vmem:[%s2564_s7 + $0x18] sm:$0xff]  }
 0x1d5   :  { %1491 = vmatprep.subr.bf16.mxu1 %v2129_v50  ;;  %1569 = vmatprep.subr.bf16.mxu0 %v2132_v51  ;;  %v2210_v50 = vld [vmem:[%s2564_s7 + $0x10] sm:$0xff]  }
 0x1d6   :  { %v660_v51 = vpack.c.bf16 %v652_v48, %v652_v48 }
 0x1d8   :  { %1492 = vmatpush1.bf16.msra.mxu1 %v2127_v52  ;;  %1570 = vmatpush1.bf16.msra.mxu0 %v2130_v53  ;;  %v2211_v52 = vld [vmem:[%s2564_s7 + $0x58] sm:$0xff]   ;;  %v2213_v53 = vld [vmem:[%s2564_s7 + $0x60] sm:$0xff]  }
 0x1d9   :  { %1493 = vmatprep.subr.bf16.mxu1 %v2135_v54  ;;  %1571 = vmatprep.subr.bf16.mxu0 %v2138_v55  ;;  %v2214_v54 = vld [vmem:[%s2564_s7 + $0x20] sm:$0xff]   ;;  %v2215_v55 = vld [vmem:[%s2564_s7 + $0x68] sm:$0xff]  }
 0x1dc   :  { %1494 = vmatpush1.bf16.msra.mxu1 %v2133_v56  ;;  %1572 = vmatpush1.bf16.msra.mxu0 %v2136_v57  ;;  %v2216_v56 = vld [vmem:[%s2564_s7 + $0x28] sm:$0xff]   ;;  %v2217_v57 = vld [vmem:[%s2564_s7 + $0x70] sm:$0xff]  }
 0x1dd   :  { %1495 = vmatprep.subr.bf16.mxu1 %v2141_v58  ;;  %1573 = vmatprep.subr.bf16.mxu0 %v2144_v60  ;;  %v2218_v58 = vld [vmem:[%s2564_s7 + $0x30] sm:$0xff]   ;;  %v2219_v60 = vld [vmem:[%s2564_s7 + $0x78] sm:$0xff]  }
 0x1e0   :  { %1496 = vmatpush1.bf16.msra.mxu1 %v2139_v63  ;;  %1574 = vmatpush1.bf16.msra.mxu0 %v2142_v0  ;;  %v2220_v63 = vld [vmem:[%s2564_s7 + $0x38] sm:$0xff]   ;;  %v790_v0 = vld [vmem:[%s2563_s6] sm:$0x3] }
 0x1e1   :  { %1497 = vmatprep.subr.bf16.mxu1 %v2147_v1  ;;  %1575 = vmatprep.subr.bf16.mxu0 %v2150_v2 }
 0x1e4   :  { %1498 = vmatpush1.bf16.msra.mxu1 %v2145_v3  ;;  %1576 = vmatpush1.bf16.msra.mxu0 %v2148_v4  ;;  %v795_v4 = vrot.slane %v790_v0, %v600_v61 }
 0x1e5   :  { %1499 = vmatprep.subr.bf16.mxu1 %v2153_v5  ;;  %1577 = vmatprep.subr.bf16.mxu0 %v2156_v6  ;;  %v799_v6 = vrot.slane %v790_v0, %v604_v62 }
 0x1e8   :  { %1500 = vmatpush1.bf16.msra.mxu1 %v2151_v7  ;;  %1578 = vmatpush1.bf16.msra.mxu0 %v2154_v8 }
 0x1e9   :  { %1501 = vmatprep.subr.bf16.mxu1 %v2159_v9  ;;  %1579 = vmatprep.subr.bf16.mxu0 %v2162_v10 }
 0x1ec   :  { %1502 = vmatpush1.bf16.msra.mxu1 %v2157_v11  ;;  %1580 = vmatpush1.bf16.msra.mxu0 %v2160_v12 }
 0x1ed   :  { %1503 = vmatprep.subr.bf16.mxu1 %v2165_v13  ;;  %1581 = vmatprep.subr.bf16.mxu0 %v2168_v14 }
 0x1f0   :  { %1504 = vmatpush1.bf16.msra.mxu1 %v2163_v15  ;;  %1582 = vmatpush1.bf16.msra.mxu0 %v2166_v16 }
 0x1f1   :  { %1505 = vmatprep.subr.bf16.mxu1 %v2171_v17  ;;  %1583 = vmatprep.subr.bf16.mxu0 %v2174_v18 }
 0x1f4   :  { %1506 = vmatpush1.bf16.msra.mxu1 %v2169_v19  ;;  %1584 = vmatpush1.bf16.msra.mxu0 %v2172_v20 }
 0x1f5   :  { %1507 = vmatprep.subr.bf16.mxu1 %v2177_v22  ;;  %1585 = vmatprep.subr.bf16.mxu0 %v2180_v23 }
 0x1f8   :  { %1508 = vmatpush1.bf16.msra.mxu1 %v2175_v24  ;;  %1586 = vmatpush1.bf16.msra.mxu0 %v2178_v25 }
 0x1f9   :  { %1509 = vmatprep.subr.bf16.mxu1 %v2183_v26  ;;  %1587 = vmatprep.subr.bf16.mxu0 %v2186_v27 }
 0x1fc   :  { %1510 = vmatpush1.bf16.msra.mxu1 %v2181_v28  ;;  %1588 = vmatpush1.bf16.msra.mxu0 %v2184_v29 }
 0x1fd   :  { %1511 = vmatprep.subr.bf16.mxu1 %v2189_v30  ;;  %1589 = vmatprep.subr.bf16.mxu0 %v2192_v31 }
 0x200   :  { %1512 = vmatpush1.bf16.msra.mxu1 %v2187_v33  ;;  %1590 = vmatpush1.bf16.msra.mxu0 %v2190_v35 }
 0x201   :  { %1513 = vmatprep.subr.bf16.mxu1 %v2195_v36  ;;  %1591 = vmatprep.subr.bf16.mxu0 %v2198_v37 }
 0x204   :  { %1514 = vmatpush1.bf16.msra.mxu1 %v2193_v38  ;;  %1592 = vmatpush1.bf16.msra.mxu0 %v2196_v32 }
 0x205   :  { %1593 = vmatprep.subr.bf16.mxu0 %v2201_v40  ;;  %1964 = vmatprep.subr.bf16.mxu1 %v2205_v41 }
 0x207   :  { %1516 = vmatmul.mubr.bf16.vlgmr.msra.gmra.mrb[8].mxu1 %v656_v34 }
 0x208   :  { %1594 = vmatpush1.bf16.msra.mxu0 %v2199_v42  ;;  %1965 = vmatpush3.bf16.msra.mxu1 %v2206_v44 }
 0x209   :  { %1595 = vmatprep.subr.bf16.mxu0 %v2204_v45  ;;  %1966 = vmatprep.subr.bf16.mxu1 %v2207_v43 }
 0x20c   :  { %1596 = vmatpush1.bf16.msra.mxu0 %v2202_v46  ;;  %1967 = vmatpush3.bf16.msra.mxu1 %v2208_v47 }
 0x20d   :  { %1968 = vmatprep.subr.bf16.mxu1 %v2209_v49 }
 0x20f   :  { %1598 = vmatmul.mubr.bf16.vlgmr.msra.gmra.mrb[24].mxu0 %v660_v51 }
 0x210   :  { %1969 = vmatpush3.bf16.msra.mxu1 %v2210_v50 }
 0x211   :  { %1970 = vmatprep.subr.bf16.mxu1 %v2211_v52 }
 0x214   :  { %1971 = vmatpush3.bf16.msra.mxu1 %v2212_v59 }
 0x215   :  { %1972 = vmatprep.subr.bf16.mxu1 %v2213_v53 }
 0x218   :  { %1973 = vmatpush3.bf16.msra.mxu1 %v2214_v54 }
 0x219   :  { %1974 = vmatprep.subr.bf16.mxu1 %v2215_v55 }
 0x21c   :  { %1975 = vmatpush3.bf16.msra.mxu1 %v2216_v56 }
 0x21d   :  { %1976 = vmatprep.subr.bf16.mxu1 %v2217_v57 }
 0x220   :  { %1977 = vmatpush3.bf16.msra.mxu1 %v2218_v58 }
 0x221   :  { %1978 = vmatprep.subr.bf16.mxu1 %v2219_v60 }
 0x224   :  { %1979 = vmatpush3.bf16.msra.mxu1 %v2220_v63 }
 0x2da   :  { %v1517_v1 = vpop.f32.mrb[8].mxu1 }
 0x2db   :  { %v1519_v2 = vpop.f32.mrb[9].mxu1  ;;  %v1986_v7 = vadd.f32 %v1517_v1, %v795_v4 }
 0x2dc   :  { %v1521_v3 = vpop.f32.mrb[10].mxu1  ;;  %v1988_v8 = vadd.f32 %v1519_v2, %v799_v6 }
 0x2dd   :  { %v1522_v5 = vpop.f32.mrb[11].mxu1 }
 0x2e2   :  { %v1599_v9 = vpop.f32.mrb[24].mxu0 }
 0x2e3   :  { %v1987_v10 = vadd.f32 %v1986_v7, %v1599_v9  ;;  %v1601_v11 = vpop.f32.mrb[25].mxu0 }
 0x2e4   :  { %v1989_v12 = vadd.f32 %v1988_v8, %v1601_v11  ;;  %v1603_v13 = vpop.f32.mrb[26].mxu0 }
 0x2e5   :  { %v1606_v14 = vmax.f32 %v1987_v10, 0.0  ;;  %v1604_v15 = vpop.f32.mrb[27].mxu0 }
 0x2e6   :  { %v1607_v16 = vmax.f32 %v1989_v12, 0.0 }
 0x2e7   :  { %v1608_v18 = vpack.c.bf16 %v1606_v14, %v1606_v14 }
 0x2e8   :  { %v1609_v17 = vpack.c.bf16 %v1607_v16, %v1607_v16 }
 0x2ea   :  { %1777 = vmatprep.mubr.bf16.mxu1 %v1609_v17 }
 0x2eb   :  { %1778 = vmatmul.mubr.bf16.vlgmr.msra.gmra.mrb[12].mxu1 %v1608_v18 }
 0x3be   :  { %v1980_v19 = vpop.f32.mrb[12].mxu1 }
 0x3bf   :  { %v1981_v61 = vpop.f32.mrb[13].mxu1 }
 0x3c0   :  { %v1982_v62 = vadd.f32 %v1981_v61, %v1980_v19  ;;  %v1983_v20 = vpop.f32.mrb[14].mxu1 }
 0x3c1   :  { %v1984_v22 = vpop.f32.mrb[15].mxu1 }
 0x3c2   :  { %v1780_v23 = vadd.f32 %v1982_v62, %v1947_v21 }
 0x3c4   :  { %v1785_v24 = vmax.f32 %v1780_v23, 0.0 }
 0x3c6   :  { %1786 = vst [vmem:[#allocation7] sm:$0x3] %v1785_v24 }
 0x3c7   :  { %2276 = shalt.err (!%p2273_p6)
}
 0x3c8   :  { %s2277_s8 = scalar_lea.hbm %s2566_s9, 32 }
 0x3c9   :  { %p2278_p7 = scmp.ne.s32.totalorder %s2566_s9, %s2277_s8  ;;  %p2281_p8 = scmp.lt.u32.totalorder %s2277_s8, %s2566_s9 }
 0x3cb   :  { %p2283_p9 = pnand %p2281_p8, %p2278_p7 }
 0x3cd   :  { %2286 = shalt.err (!%p2283_p9)
}
 0x3ce   :  { %1796 = dma.vmem_to_hbm [thread:$0]  %s1794_s10, 32, %s2566_s9, [#allocation4]  }
 0x3cf   :  { %2291 = dma.done.wait [#allocation4], 32  }
 0x3d0   :  { %2292 = vsyncadd [#allocation4], 4294967264 }
 0x3d1   :  { %1800 = vsyncpa [#allocation3], 1 }
 0x3d2   :  { %1801 = vsyncpa [#allocation6], 1 }
 0x3d3   :  { %1802 = vsyncpa [#allocation4], 1 }

</bundles_post_ra>
